<compile_context>
chip_gen: v5e
topology: v5e:2x2
jax: 0.10.0
libtpu: 0.0.40
codegen_flags: <defaults>
</compile_context>

<pallas_src>
import functools

import jax
import jax.numpy as jnp
from jax import lax
from jax.experimental import pallas as pl
from jax.experimental.pallas import tpu as pltpu

EPS = 1e-5
NEG_SLOPE = 0.1
LANE = 128
STATS_TILE_M = 2048          # row tile for the HBM-bound bn1 stats reduction


def _round_up(x, m):
    return (x + m - 1) // m * m


def _vmem_limit_bytes():
    cap = 64 * 1024 * 1024
    try:
        info = pltpu.get_tpu_info()
        cap = int(getattr(info, "vmem_capacity_bytes", cap) or cap)
    except Exception:
        pass
    return int(min(cap * 3 // 4, 100 * 1024 * 1024))


_VMEM_LIMIT = _vmem_limit_bytes()


def _cparams(semantics):
    return pltpu.CompilerParams(dimension_semantics=semantics,
                                vmem_limit_bytes=_VMEM_LIMIT)


# ---------------------------------------------------------------------------
# In-kernel helpers
# ---------------------------------------------------------------------------
def _tap_slice(row_ref, kw, stride, wo, w_in):
    """Columns of one input row needed by tap kw (3x3 conv, pad=1).

    Returns (seg, lead, tail): seg holds the in-range columns (strided load for
    stride>1); lead/tail (0 or 1) zero rows must be prepended/appended so the
    result has exactly `wo` rows (conv zero padding, applied post-BN).
    """
    start = kw - 1
    lead = 1 if start < 0 else 0
    last = start + (wo - 1) * stride
    tail = 1 if last > w_in - 1 else 0
    n_valid = wo - lead - tail
    eff = start + lead * stride
    if stride == 1:
        seg = row_ref[pl.ds(eff, n_valid), :]
    else:
        seg = row_ref[pl.ds(eff, n_valid, stride=stride), :]
    return seg, lead, tail


def _zpad_rows(v, lead, tail):
    if lead:
        v = jnp.concatenate([jnp.zeros((lead, v.shape[1]), v.dtype), v], axis=0)
    if tail:
        v = jnp.concatenate([v, jnp.zeros((tail, v.shape[1]), v.dtype)], axis=0)
    return v


# ---------------------------------------------------------------------------
# Pallas kernels
# ---------------------------------------------------------------------------
def _bn_stats_kernel(x_ref, stats_ref):
    """Per-tile partial (sum, sum_sq) over rows; fully parallel across the grid."""
    x = x_ref[...].astype(jnp.float32)
    s = jnp.sum(x, axis=0, keepdims=True)
    q = jnp.sum(x * x, axis=0, keepdims=True)
    stats_ref[...] = jnp.concatenate([s, q], axis=0)


def _conv1_kernel(t0_ref, t1_ref, t2_ref, scale_ref, shift_ref, w_ref,
                  h1_ref, stats_ref, *, stride, H, W, Wo):
    """One output row of conv1 with fused bn1-apply + LeakyReLU prologue and
    fused bn2 partial-statistics epilogue.  9 MXU dots accumulated in f32."""
    h = pl.program_id(1)
    scale = scale_ref[...]
    shift = shift_ref[...]
    taps = (t0_ref, t1_ref, t2_ref)
    cout_p = w_ref.shape[-1]
    acc = jnp.zeros((Wo, cout_p), jnp.float32)
    for kh in range(3):
        r = h * stride + (kh - 1)
        hmask = jnp.logical_and(r >= 0, r <= H - 1).astype(jnp.float32)
        for kw in range(3):
            seg, lead, tail = _tap_slice(taps[kh], kw, stride, Wo, W)
            v = seg.astype(jnp.float32) * scale + shift          # bn1 (folded)
            v = jnp.where(v >= 0, v, NEG_SLOPE * v)              # LeakyReLU(0.1)
            v = v * hmask                                        # H zero-padding (post-BN)
            v = _zpad_rows(v, lead, tail)                        # W zero-padding (post-BN)
            acc = acc + jnp.dot(v.astype(jnp.bfloat16), w_ref[kh, kw],
                                preferred_element_type=jnp.float32)
    h1_ref[...] = acc.astype(h1_ref.dtype)                       # bf16 intermediate
    s = jnp.sum(acc, axis=0, keepdims=True)
    q = jnp.sum(acc * acc, axis=0, keepdims=True)
    stats_ref[...] = jnp.concatenate([s, q], axis=0)             # bn2 partial stats


def _conv2_core(h, taps, scale2, shift2, w_ref, Ho, Wo):
    """conv2 (3x3, stride 1, pad 1) on h2 = LeakyReLU(bn2(h1)); bn2 fused as prologue."""
    cout_p = w_ref.shape[-1]
    acc = jnp.zeros((Wo, cout_p), jnp.float32)
    for kh in range(3):
        r = h + (kh - 1)
        hmask = jnp.logical_and(r >= 0, r <= Ho - 1).astype(jnp.float32)
        for kw in range(3):
            seg, lead, tail = _tap_slice(taps[kh], kw, 1, Wo, Wo)
            v = seg.astype(jnp.float32) * scale2 + shift2
            v = jnp.where(v >= 0, v, NEG_SLOPE * v)
            v = v * hmask
            v = _zpad_rows(v, lead, tail)
            acc = acc + jnp.dot(v.astype(jnp.bfloat16), w_ref[kh, kw],
                                preferred_element_type=jnp.float32)
    return acc


def _conv2_identity_kernel(t0_ref, t1_ref, t2_ref, scale2_ref, shift2_ref, w2_ref,
                           res_ref, out_ref, *, Ho, Wo):
    h = pl.program_id(1)
    acc = _conv2_core(h, (t0_ref, t1_ref, t2_ref),
                      scale2_ref[...], shift2_ref[...], w2_ref, Ho, Wo)
    out_ref[...] = acc + res_ref[...].astype(jnp.float32)         # identity residual (exact f32)


def _conv2_shortcut_kernel(t0_ref, t1_ref, t2_ref, scale2_ref, shift2_ref, w2_ref,
                           x_ref, scale1_ref, shift1_ref, wsc_ref,
                           out_ref, *, Ho, Wo, stride):
    h = pl.program_id(1)
    acc = _conv2_core(h, (t0_ref, t1_ref, t2_ref),
                      scale2_ref[...], shift2_ref[...], w2_ref, Ho, Wo)
    # fused 1x1 shortcut conv on a = LeakyReLU(bn1(x)) at strided positions
    if stride == 1:
        seg = x_ref[...]
    else:
        seg = x_ref[pl.ds(0, Wo, stride=stride), :]
    a = seg.astype(jnp.float32) * scale1_ref[...] + shift1_ref[...]
    a = jnp.where(a >= 0, a, NEG_SLOPE * a)
    acc = acc + jnp.dot(a.astype(jnp.bfloat16), wsc_ref[...],
                        preferred_element_type=jnp.float32)
    out_ref[...] = acc


# ---------------------------------------------------------------------------
# pallas_call wrappers
# ---------------------------------------------------------------------------
def _moments(stats, count):
    s = jnp.sum(stats[:, 0, :], axis=0)
    q = jnp.sum(stats[:, 1, :], axis=0)
    mean = s / count
    var = q / count - mean * mean          # biased, single-pass (E[x^2]-mean^2), f32
    return mean.reshape(1, -1), lax.rsqrt(var + EPS).reshape(1, -1)


def _bn_stats(x2d, m_real):
    m, cp = x2d.shape
    tile = int(min(STATS_TILE_M, _round_up(m, 8)))
    g = (m + tile - 1) // tile
    mp = g * tile
    if mp != m:
        x2d = jnp.pad(x2d, ((0, mp - m), (0, 0)))   # zero rows are stats-safe
    stats = pl.pallas_call(
        _bn_stats_kernel,
        grid=(g,),
        in_specs=[pl.BlockSpec((tile, cp), lambda i: (i, 0))],
        out_specs=pl.BlockSpec((None, 2, cp), lambda i: (i, 0, 0)),
        out_shape=jax.ShapeDtypeStruct((g, 2, cp), jnp.float32),
        compiler_params=_cparams(("parallel",)),
    )(x2d)
    return _moments(stats, m_real)


def _conv1(x_cp, scale1, shift1, w1, stride, Ho, Wo):
    N, H, W, cin_p = x_cp.shape
    cout_p = w1.shape[-1]

    def tap_spec(kh):
        def imap(n, h):
            r = jnp.minimum(jnp.maximum(h * stride + (kh - 1), 0), H - 1)
            return (n, r, 0, 0)
        return pl.BlockSpec((None, None, W, cin_p), imap)

    kernel = functools.partial(_conv1_kernel, stride=stride, H=H, W=W, Wo=Wo)
    h1, stats = pl.pallas_call(
        kernel,
        grid=(N, Ho),
        in_specs=[tap_spec(0), tap_spec(1), tap_spec(2),
                  pl.BlockSpec((1, cin_p), lambda n, h: (0, 0)),
                  pl.BlockSpec((1, cin_p), lambda n, h: (0, 0)),
                  pl.BlockSpec((3, 3, cin_p, cout_p), lambda n, h: (0, 0, 0, 0))],
        out_specs=(pl.BlockSpec((None, None, Wo, cout_p), lambda n, h: (n, h, 0, 0)),
                   pl.BlockSpec((None, 2, cout_p), lambda n, h: (n * Ho + h, 0, 0))),
        out_shape=(jax.ShapeDtypeStruct((N, Ho, Wo, cout_p), jnp.bfloat16),
                   jax.ShapeDtypeStruct((N * Ho, 2, cout_p), jnp.float32)),
        compiler_params=_cparams(("parallel", "parallel")),
    )(x_cp, x_cp, x_cp, scale1, shift1, w1)
    return h1, stats


def _h1_tap_spec(kh, Ho, Wo, cout_p):
    def imap(n, h):
        r = jnp.minimum(jnp.maximum(h + (kh - 1), 0), Ho - 1)
        return (n, r, 0, 0)
    return pl.BlockSpec((None, None, Wo, cout_p), imap)


def _conv2_identity(h1, scale2, shift2, w2, x_cp):
    N, Ho, Wo, cout_p = h1.shape
    kernel = functools.partial(_conv2_identity_kernel, Ho=Ho, Wo=Wo)
    return pl.pallas_call(
        kernel,
        grid=(N, Ho),
        in_specs=[_h1_tap_spec(0, Ho, Wo, cout_p),
                  _h1_tap_spec(1, Ho, Wo, cout_p),
                  _h1_tap_spec(2, Ho, Wo, cout_p),
                  pl.BlockSpec((1, cout_p), lambda n, h: (0, 0)),
                  pl.BlockSpec((1, cout_p), lambda n, h: (0, 0)),
                  pl.BlockSpec((3, 3, cout_p, cout_p), lambda n, h: (0, 0, 0, 0)),
                  pl.BlockSpec((None, None, Wo, cout_p), lambda n, h: (n, h, 0, 0))],
        out_specs=pl.BlockSpec((None, None, Wo, cout_p), lambda n, h: (n, h, 0, 0)),
        out_shape=jax.ShapeDtypeStruct((N, Ho, Wo, cout_p), jnp.float32),
        compiler_params=_cparams(("parallel", "parallel")),
    )(h1, h1, h1, scale2, shift2, w2, x_cp)


def _conv2_shortcut(h1, scale2, shift2, w2, x_cp, scale1, shift1, wsc, stride):
    N, Ho, Wo, cout_p = h1.shape
    _, H, W, cin_p = x_cp.shape
    kernel = functools.partial(_conv2_shortcut_kernel, Ho=Ho, Wo=Wo, stride=stride)
    return pl.pallas_call(
        kernel,
        grid=(N, Ho),
        in_specs=[_h1_tap_spec(0, Ho, Wo, cout_p),
                  _h1_tap_spec(1, Ho, Wo, cout_p),
                  _h1_tap_spec(2, Ho, Wo, cout_p),
                  pl.BlockSpec((1, cout_p), lambda n, h: (0, 0)),
                  pl.BlockSpec((1, cout_p), lambda n, h: (0, 0)),
                  pl.BlockSpec((3, 3, cout_p, cout_p), lambda n, h: (0, 0, 0, 0)),
                  pl.BlockSpec((None, None, W, cin_p), lambda n, h: (n, h * stride, 0, 0)),
                  pl.BlockSpec((1, cin_p), lambda n, h: (0, 0)),
                  pl.BlockSpec((1, cin_p), lambda n, h: (0, 0)),
                  pl.BlockSpec((cin_p, cout_p), lambda n, h: (0, 0))],
        out_specs=pl.BlockSpec((None, None, Wo, cout_p), lambda n, h: (n, h, 0, 0)),
        out_shape=jax.ShapeDtypeStruct((N, Ho, Wo, cout_p), jnp.float32),
        compiler_params=_cparams(("parallel", "parallel")),
    )(h1, h1, h1, scale2, shift2, w2, x_cp, scale1, shift1, wsc)


# ---------------------------------------------------------------------------
# Layout helpers (tiny, one-time glue)
# ---------------------------------------------------------------------------
def _pad_cvec(v, cp):
    return jnp.pad(v.astype(jnp.float32), (0, cp - v.shape[0])).reshape(1, cp)


def _conv3x3_weight(w_oihw, cin_p, cout_p):
    cout, cin, kh, kw = w_oihw.shape
    w = jnp.transpose(w_oihw.astype(jnp.float32), (2, 3, 1, 0))   # (KH,KW,Cin,Cout)
    w = jnp.pad(w, ((0, 0), (0, 0), (0, cin_p - cin), (0, cout_p - cout)))
    return w.astype(jnp.bfloat16)


def _conv1x1_weight(w_oihw, cin_p, cout_p):
    cout, cin = w_oihw.shape[0], w_oihw.shape[1]
    w = jnp.transpose(w_oihw[:, :, 0, 0].astype(jnp.float32), (1, 0))  # (Cin,Cout)
    w = jnp.pad(w, ((0, cin_p - cin), (0, cout_p - cout)))
    return w.astype(jnp.bfloat16)


# ---------------------------------------------------------------------------
# MetaBasicBlock forward (Pallas path)
# ---------------------------------------------------------------------------
def meta_basic_block_forward(x_nchw, params, stride, equal_in_out):
    if equal_in_out and stride != 1:
        raise ValueError("identity shortcut requires stride == 1 (as in WideResNet)")

    N, cin, H, W = x_nchw.shape
    cout = params["conv1_w"].shape[0]
    cin_p = _round_up(cin, LANE)
    cout_p = _round_up(cout, LANE)

    # Single glue pass over x: NCHW -> NHWC + zero channel-pad (lane dense).
    x_cp = jnp.pad(jnp.transpose(x_nchw.astype(jnp.float32), (0, 2, 3, 1)),
                   ((0, 0), (0, 0), (0, 0), (0, cin_p - cin)))

    # --- bn1 batch statistics (parallel partial-sum Pallas reduction) ---
    m0 = N * H * W
    mean1, rstd1 = _bn_stats(x_cp.reshape(m0, cin_p), m0)
    scale1 = _pad_cvec(params["bn1_w"], cin_p) * rstd1
    shift1 = _pad_cvec(params["bn1_b"], cin_p) - mean1 * scale1

    # --- conv1 (3x3, stride) with fused bn1+lrelu prologue, bn2-stats epilogue ---
    Ho = (H + 2 - 3) // stride + 1
    Wo = (W + 2 - 3) // stride + 1
    w1 = _conv3x3_weight(params["conv1_w"], cin_p, cout_p)
    h1, stats2 = _conv1(x_cp, scale1, shift1, w1, stride, Ho, Wo)

    mean2, rstd2 = _moments(stats2, N * Ho * Wo)
    scale2 = _pad_cvec(params["bn2_w"], cout_p) * rstd2
    shift2 = _pad_cvec(params["bn2_b"], cout_p) - mean2 * scale2

    # --- conv2 (3x3, stride 1) with fused bn2+lrelu prologue + fused shortcut ---
    w2 = _conv3x3_weight(params["conv2_w"], cout_p, cout_p)
    if equal_in_out:
        out = _conv2_identity(h1, scale2, shift2, w2, x_cp)
    else:
        wsc = _conv1x1_weight(params["convsc_w"], cin_p, cout_p)
        out = _conv2_shortcut(h1, scale2, shift2, w2, x_cp, scale1, shift1, wsc, stride)

    out = out[..., :cout]
    return jnp.transpose(out, (0, 3, 1, 2))                       # NHWC -> NCHW


# ---------------------------------------------------------------------------
# Pure-JAX f32 reference (for correctness check only)
# ---------------------------------------------------------------------------
def _ref_forward(x, params, stride, equal_in_out):
    def bn(v, g, b):
        mean = v.mean(axis=(0, 2, 3), keepdims=True)
        var = ((v - mean) ** 2).mean(axis=(0, 2, 3), keepdims=True)
        return (v - mean) / jnp.sqrt(var + EPS) * g.reshape(1, -1, 1, 1) + b.reshape(1, -1, 1, 1)

    def lrelu(v):
        return jnp.where(v >= 0, v, NEG_SLOPE * v)

    def conv(v, w, s, p):
        return jax.lax.conv_general_dilated(
            v, w, (s, s), ((p, p), (p, p)),
            dimension_numbers=("NCHW", "OIHW", "NCHW"),
            precision=jax.lax.Precision.HIGHEST)

    a = lrelu(bn(x, params["bn1_w"], params["bn1_b"]))
    h = lrelu(bn(conv(a, params["conv1_w"], stride, 1), params["bn2_w"], params["bn2_b"]))
    out = conv(h, params["conv2_w"], 1, 1)
    sc = x if equal_in_out else conv(a, params["convsc_w"], stride, 0)
    return sc + out


# ---------------------------------------------------------------------------
# Parameter construction (deterministic, synthetic)
# ---------------------------------------------------------------------------
def make_params(key, in_planes, out_planes, equal_in_out):
    k1, k2, k3 = jax.random.split(key, 3)
    params = {
        "bn1_w": jnp.ones((in_planes,), jnp.float32),
        "bn1_b": jnp.zeros((in_planes,), jnp.float32),
        "bn2_w": jnp.ones((out_planes,), jnp.float32),
        "bn2_b": jnp.zeros((out_planes,), jnp.float32),
        "conv1_w": 0.1 * jax.random.normal(k1, (out_planes, in_planes, 3, 3), jnp.float32),
        "conv2_w": 0.1 * jax.random.normal(k2, (out_planes, out_planes, 3, 3), jnp.float32),
    }
    if not equal_in_out:
        params["convsc_w"] = 0.1 * jax.random.normal(
            k3, (out_planes, in_planes, 1, 1), jnp.float32)
    return params


if __name__ == "__main__":
    key = jax.random.PRNGKey(0)
    kx, kp1, kp2 = jax.random.split(key, 3)

    x = jax.random.normal(kx, (2, 4, 16, 16), jnp.float32)        # NCHW

    # Tolerances are bf16-matmul-operand tolerances (f32 accumulation kept).
    TOL = 3e-2

    # Config A: equalInOut, stride=1  (identity shortcut fused as epilogue add)
    paramsA = make_params(kp1, 4, 4, equal_in_out=True)
    outA = meta_basic_block_forward(x, paramsA, stride=1, equal_in_out=True)
    outA = jax.block_until_ready(outA)
    refA = _ref_forward(x, paramsA, 1, True)
    assert outA.shape == (2, 4, 16, 16)
    assert jnp.allclose(outA, refA, rtol=TOL, atol=TOL), float(jnp.max(jnp.abs(outA - refA)))

    # Config B: in != out, stride=2  (1x1 conv shortcut fused into conv2's kernel)
    paramsB = make_params(kp2, 4, 8, equal_in_out=False)
    outB = meta_basic_block_forward(x, paramsB, stride=2, equal_in_out=False)
    outB = jax.block_until_ready(outB)
    refB = _ref_forward(x, paramsB, 2, False)
    assert outB.shape == (2, 8, 8, 8)
    assert jnp.allclose(outB, refB, rtol=TOL, atol=TOL), float(jnp.max(jnp.abs(outB - refB)))

    print("KERNEL_OK")
</pallas_src>

<mosaic_0001>
module attributes {stable_mosaic.version = 11 : i64} {
  func.func @_bn_stats_kernel(%arg0: i32, %arg1: memref<512x128xf32, #tpu.memory_space<vmem>>, %arg2: memref<1x2x128xf32, #tpu.memory_space<vmem>>) attributes {dimension_semantics = [#tpu.dimension_semantics<parallel>], iteration_bounds = array<i64: 1>, scalar_prefetch = 0 : i64, scratch_operands = 0 : i64, tpu.core_type = #tpu.core_type<tc>, window_params = [{transform_indices = @transform_0, window_bounds = array<i64: 512, 128>}, {transform_indices = @transform_1, window_bounds = array<i64: 1, 2, 128>}]} {
    %c0 = arith.constant 0 : index
    %c0_0 = arith.constant 0 : index
    %0 = vector.load %arg1[%c0, %c0_0] : memref<512x128xf32, #tpu.memory_space<vmem>>, vector<512x128xf32>
    %cst = arith.constant dense<0.000000e+00> : vector<128xf32>
    %1 = vector.multi_reduction <add>, %0, %cst [0] : vector<512x128xf32> to vector<128xf32>
    %2 = vector.shape_cast %1 : vector<128xf32> to vector<1x128xf32>
    %3 = arith.mulf %0, %0 : vector<512x128xf32>
    %cst_1 = arith.constant dense<0.000000e+00> : vector<128xf32>
    %4 = vector.multi_reduction <add>, %3, %cst_1 [0] : vector<512x128xf32> to vector<128xf32>
    %5 = vector.shape_cast %4 : vector<128xf32> to vector<1x128xf32>
    %6 = tpu.concatenate %2, %5 in 0 : vector<1x128xf32>, vector<1x128xf32> -> vector<2x128xf32>
    %c0_2 = arith.constant 0 : index
    %c0_3 = arith.constant 0 : index
    %c0_4 = arith.constant 0 : index
    %7 = vector.load %arg2[%c0_2, %c0_3, %c0_4] : memref<1x2x128xf32, #tpu.memory_space<vmem>>, vector<1x2x128xf32>
    %8 = vector.shape_cast %7 : vector<1x2x128xf32> to vector<2x128xf32>
    %9 = vector.shape_cast %6 : vector<2x128xf32> to vector<1x2x128xf32>
    tpu.vector_store %arg2[%c0_2, %c0_3, %c0_4], %9 {strides = array<i32>} : memref<1x2x128xf32, #tpu.memory_space<vmem>>, vector<1x2x128xf32>,
    return
  }
  func.func @transform_0(%arg0: i32) -> (i32, i32) {
    %c0_i32 = arith.constant 0 : i32
    %c0_i32_0 = arith.constant 0 : i32
    return %arg0, %c0_i32 : i32, i32
  }
  func.func @transform_1(%arg0: i32) -> (i32, i32, i32) {
    %c0_i32 = arith.constant 0 : i32
    %c0_i32_0 = arith.constant 0 : i32
    %c0_i32_1 = arith.constant 0 : i32
    return %arg0, %c0_i32, %c0_i32_0 : i32, i32, i32
  }
}

</mosaic_0001>

<bundles_post_ra>
// kernel: tpu_custom_call.1
= control target key start
LH: loop header
LB: loop body
LE: loop exit
PB: predicated region body
PF: predicated region fallthrough
CT: control target
= control target key end

     0   :  { %6 = vsyncpa [#allocation3], 0  ;;  %s387_s0 = inlined_call_operand.hbm [shape: f32[512,128], index: 0, kind: input, shape index: {}]   ;;  %s388_s1 = inlined_call_operand.hbm [shape: f32[1,2,128], index: 1, kind: output, shape index: {}]  }
   0x1   :  { %7 = vsyncpa [#allocation4], 0  ;;  %s12_s8 = sshll.u32 %s387_s0, 4  ;;  %s367_s9 = smov [#allocation2]   ;;  %s13_s8 = int_to_ptr.hbm [resolvable:$true] %s12_s8 }
   0x2   :  { %s14_s10 = sshll.u32 %s367_s9, 4  ;;  %s368_s11 = smov 128   ;;  %s15_s10 = int_to_ptr.vmem [resolvable:$true] %s14_s10 }
   0x3   :  { %s369_s12 = smov 8  }
   0x4   :  { %20 = dma.hbm_to_vmem [thread:$0]  %s13_s8, 8192, %s15_s10, [#allocation3], %s368_s11, %s368_s11, %s369_s12  }
   0x5   :  { %363 = dma.done.wait [#allocation3], 8192  }
   0x6   :  { %364 = vsyncadd [#allocation3], 4294959104  ;;  %v25_v0 = vld [vmem:[#allocation2] sm:$0xff]  ;;  %v26_v1 = vld [vmem:[#allocation2 + $0x8] sm:$0xff]  ;;  %s370_s0 = smov [#allocation5]   ;;  %s301_s16 = sshll.u32 %s388_s1, 4  ;;  %s302_s16 = int_to_ptr.hbm [resolvable:$true] %s301_s16 }
   0x7   :  { %v27_v2 = vld [vmem:[#allocation2 + $0x10] sm:$0xff]  ;;  %v28_v3 = vld [vmem:[#allocation2 + $0x18] sm:$0xff]  ;;  %v89_v4 = vadd.f32 %v26_v1, %v25_v0  ;;  %v158_v5 = vmul.f32 %v25_v0, %v25_v0  ;;  %v159_v6 = vmul.f32 %v26_v1, %v26_v1  ;;  %v29_v8 = vld [vmem:[#allocation2 + $0x20] sm:$0xff]  ;;  %s299_s13 = sshll.u32 %s370_s0, 4  ;;  %vm291_vm0 = vcmask 1040384   ;;  %s300_s13 = int_to_ptr.vmem [resolvable:$true] %s299_s13 }
   0x8   :  { %v160_v7 = vmul.f32 %v27_v2, %v27_v2  ;;  %v161_v10 = vmul.f32 %v28_v3, %v28_v3  ;;  %v30_v12 = vld [vmem:[#allocation2 + $0x28] sm:$0xff]  ;;  %v162_v14 = vmul.f32 %v29_v8, %v29_v8  ;;  %v31_v16 = vld [vmem:[#allocation2 + $0x30] sm:$0xff]  ;;  %v32_v20 = vld [vmem:[#allocation2 + $0x38] sm:$0xff] }
   0x9   :  { %v90_v9 = vadd.f32 %v89_v4, %v27_v2  ;;  %v222_v11 = vadd.f32 %v159_v6, %v158_v5  ;;  %v163_v18 = vmul.f32 %v30_v12, %v30_v12  ;;  %v164_v22 = vmul.f32 %v31_v16, %v31_v16  ;;  %v33_v24 = vld [vmem:[#allocation2 + $0x40] sm:$0xff]  ;;  %v34_v28 = vld [vmem:[#allocation2 + $0x48] sm:$0xff]  ;;  %v35_v32 = vld [vmem:[#allocation2 + $0x50] sm:$0xff] }
   0xa   :  { %v165_v26 = vmul.f32 %v32_v20, %v32_v20  ;;  %v166_v30 = vmul.f32 %v33_v24, %v33_v24  ;;  %v167_v34 = vmul.f32 %v34_v28, %v34_v28  ;;  %v36_v36 = vld [vmem:[#allocation2 + $0x58] sm:$0xff]  ;;  %v168_v38 = vmul.f32 %v35_v32, %v35_v32  ;;  %v37_v40 = vld [vmem:[#allocation2 + $0x60] sm:$0xff]  ;;  %v38_v44 = vld [vmem:[#allocation2 + $0x68] sm:$0xff] }
   0xb   :  { %v91_v13 = vadd.f32 %v90_v9, %v28_v3  ;;  %v223_v15 = vadd.f32 %v222_v11, %v160_v7  ;;  %v169_v42 = vmul.f32 %v36_v36, %v36_v36  ;;  %v170_v46 = vmul.f32 %v37_v40, %v37_v40  ;;  %v39_v48 = vld [vmem:[#allocation2 + $0x70] sm:$0xff]  ;;  %v40_v52 = vld [vmem:[#allocation2 + $0x78] sm:$0xff]  ;;  %v41_v56 = vld [vmem:[#allocation2 + $0x80] sm:$0xff] }
   0xc   :  { %v171_v50 = vmul.f32 %v38_v44, %v38_v44  ;;  %v172_v54 = vmul.f32 %v39_v48, %v39_v48  ;;  %v173_v58 = vmul.f32 %v40_v52, %v40_v52  ;;  %v42_v60 = vld [vmem:[#allocation2 + $0x88] sm:$0xff]  ;;  %v174_v62 = vmul.f32 %v41_v56, %v41_v56  ;;  %v43_v0 = vld [vmem:[#allocation2 + $0x90] sm:$0xff]  ;;  %v44_v4 = vld [vmem:[#allocation2 + $0x98] sm:$0xff] }
   0xd   :  { %v92_v17 = vadd.f32 %v91_v13, %v29_v8  ;;  %v224_v19 = vadd.f32 %v223_v15, %v161_v10  ;;  %v175_v2 = vmul.f32 %v42_v60, %v42_v60  ;;  %v176_v6 = vmul.f32 %v43_v0, %v43_v0  ;;  %v45_v8 = vld [vmem:[#allocation2 + $0xa0] sm:$0xff] }
   0xe   :  { %v177_v10 = vmul.f32 %v44_v4, %v44_v4 }
   0xf   :  { %v93_v21 = vadd.f32 %v92_v17, %v30_v12  ;;  %v225_v23 = vadd.f32 %v224_v19, %v162_v14  ;;  %v46_v12 = vld [vmem:[#allocation2 + $0xa8] sm:$0xff]  ;;  %v178_v14 = vmul.f32 %v45_v8, %v45_v8 }
  0x11   :  { %v94_v25 = vadd.f32 %v93_v21, %v31_v16  ;;  %v226_v27 = vadd.f32 %v225_v23, %v163_v18  ;;  %v47_v16 = vld [vmem:[#allocation2 + $0xb0] sm:$0xff]  ;;  %v179_v18 = vmul.f32 %v46_v12, %v46_v12 }
  0x13   :  { %v95_v29 = vadd.f32 %v94_v25, %v32_v20  ;;  %v227_v31 = vadd.f32 %v226_v27, %v164_v22  ;;  %v48_v20 = vld [vmem:[#allocation2 + $0xb8] sm:$0xff]  ;;  %v180_v22 = vmul.f32 %v47_v16, %v47_v16 }
  0x15   :  { %v96_v33 = vadd.f32 %v95_v29, %v33_v24  ;;  %v228_v35 = vadd.f32 %v227_v31, %v165_v26  ;;  %v49_v24 = vld [vmem:[#allocation2 + $0xc0] sm:$0xff]  ;;  %v181_v26 = vmul.f32 %v48_v20, %v48_v20 }
  0x17   :  { %v97_v37 = vadd.f32 %v96_v33, %v34_v28  ;;  %v229_v39 = vadd.f32 %v228_v35, %v166_v30  ;;  %v50_v28 = vld [vmem:[#allocation2 + $0xc8] sm:$0xff]  ;;  %v182_v30 = vmul.f32 %v49_v24, %v49_v24 }
  0x19   :  { %v98_v41 = vadd.f32 %v97_v37, %v35_v32  ;;  %v230_v43 = vadd.f32 %v229_v39, %v167_v34  ;;  %v51_v32 = vld [vmem:[#allocation2 + $0xd0] sm:$0xff]  ;;  %v183_v34 = vmul.f32 %v50_v28, %v50_v28 }
  0x1b   :  { %v99_v45 = vadd.f32 %v98_v41, %v36_v36  ;;  %v231_v47 = vadd.f32 %v230_v43, %v168_v38  ;;  %v52_v36 = vld [vmem:[#allocation2 + $0xd8] sm:$0xff]  ;;  %v184_v38 = vmul.f32 %v51_v32, %v51_v32 }
  0x1d   :  { %v100_v49 = vadd.f32 %v99_v45, %v37_v40  ;;  %v232_v51 = vadd.f32 %v231_v47, %v169_v42  ;;  %v53_v40 = vld [vmem:[#allocation2 + $0xe0] sm:$0xff]  ;;  %v185_v42 = vmul.f32 %v52_v36, %v52_v36 }
  0x1f   :  { %v101_v53 = vadd.f32 %v100_v49, %v38_v44  ;;  %v233_v55 = vadd.f32 %v232_v51, %v170_v46  ;;  %v54_v44 = vld [vmem:[#allocation2 + $0xe8] sm:$0xff]  ;;  %v186_v46 = vmul.f32 %v53_v40, %v53_v40 }
  0x21   :  { %v102_v57 = vadd.f32 %v101_v53, %v39_v48  ;;  %v234_v59 = vadd.f32 %v233_v55, %v171_v50  ;;  %v55_v48 = vld [vmem:[#allocation2 + $0xf0] sm:$0xff]  ;;  %v187_v50 = vmul.f32 %v54_v44, %v54_v44 }
  0x23   :  { %v103_v61 = vadd.f32 %v102_v57, %v40_v52  ;;  %v235_v63 = vadd.f32 %v234_v59, %v172_v54  ;;  %v56_v52 = vld [vmem:[#allocation2 + $0xf8] sm:$0xff]  ;;  %v188_v54 = vmul.f32 %v55_v48, %v55_v48 }
  0x25   :  { %v104_v1 = vadd.f32 %v103_v61, %v41_v56  ;;  %v236_v3 = vadd.f32 %v235_v63, %v173_v58  ;;  %v57_v56 = vld [vmem:[#allocation2 + $0x100] sm:$0xff]  ;;  %v189_v58 = vmul.f32 %v56_v52, %v56_v52 }
  0x27   :  { %v105_v5 = vadd.f32 %v104_v1, %v42_v60  ;;  %v237_v7 = vadd.f32 %v236_v3, %v174_v62  ;;  %v58_v60 = vld [vmem:[#allocation2 + $0x108] sm:$0xff]  ;;  %v190_v62 = vmul.f32 %v57_v56, %v57_v56 }
  0x29   :  { %v106_v9 = vadd.f32 %v105_v5, %v43_v0  ;;  %v238_v11 = vadd.f32 %v237_v7, %v175_v2  ;;  %v59_v0 = vld [vmem:[#allocation2 + $0x110] sm:$0xff]  ;;  %v191_v2 = vmul.f32 %v58_v60, %v58_v60 }
  0x2b   :  { %v107_v13 = vadd.f32 %v106_v9, %v44_v4  ;;  %v239_v15 = vadd.f32 %v238_v11, %v176_v6  ;;  %v60_v4 = vld [vmem:[#allocation2 + $0x118] sm:$0xff]  ;;  %v192_v6 = vmul.f32 %v59_v0, %v59_v0 }
  0x2d   :  { %v108_v17 = vadd.f32 %v107_v13, %v45_v8  ;;  %v240_v19 = vadd.f32 %v239_v15, %v177_v10  ;;  %v61_v8 = vld [vmem:[#allocation2 + $0x120] sm:$0xff]  ;;  %v193_v10 = vmul.f32 %v60_v4, %v60_v4 }
  0x2f   :  { %v109_v21 = vadd.f32 %v108_v17, %v46_v12  ;;  %v241_v23 = vadd.f32 %v240_v19, %v178_v14  ;;  %v62_v12 = vld [vmem:[#allocation2 + $0x128] sm:$0xff]  ;;  %v194_v14 = vmul.f32 %v61_v8, %v61_v8 }
  0x31   :  { %v110_v25 = vadd.f32 %v109_v21, %v47_v16  ;;  %v242_v27 = vadd.f32 %v241_v23, %v179_v18  ;;  %v63_v16 = vld [vmem:[#allocation2 + $0x130] sm:$0xff]  ;;  %v195_v18 = vmul.f32 %v62_v12, %v62_v12 }
  0x33   :  { %v111_v29 = vadd.f32 %v110_v25, %v48_v20  ;;  %v243_v31 = vadd.f32 %v242_v27, %v180_v22  ;;  %v64_v20 = vld [vmem:[#allocation2 + $0x138] sm:$0xff]  ;;  %v196_v22 = vmul.f32 %v63_v16, %v63_v16 }
  0x35   :  { %v112_v33 = vadd.f32 %v111_v29, %v49_v24  ;;  %v244_v35 = vadd.f32 %v243_v31, %v181_v26  ;;  %v65_v24 = vld [vmem:[#allocation2 + $0x140] sm:$0xff]  ;;  %v197_v26 = vmul.f32 %v64_v20, %v64_v20 }
  0x37   :  { %v113_v37 = vadd.f32 %v112_v33, %v50_v28  ;;  %v245_v39 = vadd.f32 %v244_v35, %v182_v30  ;;  %v66_v28 = vld [vmem:[#allocation2 + $0x148] sm:$0xff]  ;;  %v198_v30 = vmul.f32 %v65_v24, %v65_v24 }
  0x39   :  { %v114_v41 = vadd.f32 %v113_v37, %v51_v32  ;;  %v246_v43 = vadd.f32 %v245_v39, %v183_v34  ;;  %v67_v32 = vld [vmem:[#allocation2 + $0x150] sm:$0xff]  ;;  %v199_v34 = vmul.f32 %v66_v28, %v66_v28 }
  0x3b   :  { %v115_v45 = vadd.f32 %v114_v41, %v52_v36  ;;  %v247_v47 = vadd.f32 %v246_v43, %v184_v38  ;;  %v68_v36 = vld [vmem:[#allocation2 + $0x158] sm:$0xff]  ;;  %v200_v38 = vmul.f32 %v67_v32, %v67_v32 }
  0x3d   :  { %v116_v49 = vadd.f32 %v115_v45, %v53_v40  ;;  %v248_v51 = vadd.f32 %v247_v47, %v185_v42  ;;  %v69_v40 = vld [vmem:[#allocation2 + $0x160] sm:$0xff]  ;;  %v201_v42 = vmul.f32 %v68_v36, %v68_v36 }
  0x3f   :  { %v117_v53 = vadd.f32 %v116_v49, %v54_v44  ;;  %v249_v55 = vadd.f32 %v248_v51, %v186_v46  ;;  %v70_v44 = vld [vmem:[#allocation2 + $0x168] sm:$0xff]  ;;  %v202_v46 = vmul.f32 %v69_v40, %v69_v40 }
  0x41   :  { %v118_v57 = vadd.f32 %v117_v53, %v55_v48  ;;  %v250_v59 = vadd.f32 %v249_v55, %v187_v50  ;;  %v71_v48 = vld [vmem:[#allocation2 + $0x170] sm:$0xff]  ;;  %v203_v50 = vmul.f32 %v70_v44, %v70_v44 }
  0x43   :  { %v119_v61 = vadd.f32 %v118_v57, %v56_v52  ;;  %v251_v63 = vadd.f32 %v250_v59, %v188_v54  ;;  %v72_v52 = vld [vmem:[#allocation2 + $0x178] sm:$0xff]  ;;  %v204_v54 = vmul.f32 %v71_v48, %v71_v48 }
  0x45   :  { %v120_v1 = vadd.f32 %v119_v61, %v57_v56  ;;  %v252_v3 = vadd.f32 %v251_v63, %v189_v58  ;;  %v73_v56 = vld [vmem:[#allocation2 + $0x180] sm:$0xff]  ;;  %v205_v58 = vmul.f32 %v72_v52, %v72_v52 }
  0x47   :  { %v121_v5 = vadd.f32 %v120_v1, %v58_v60  ;;  %v253_v7 = vadd.f32 %v252_v3, %v190_v62  ;;  %v74_v60 = vld [vmem:[#allocation2 + $0x188] sm:$0xff]  ;;  %v206_v62 = vmul.f32 %v73_v56, %v73_v56 }
  0x49   :  { %v122_v9 = vadd.f32 %v121_v5, %v59_v0  ;;  %v254_v11 = vadd.f32 %v253_v7, %v191_v2  ;;  %v75_v0 = vld [vmem:[#allocation2 + $0x190] sm:$0xff]  ;;  %v207_v2 = vmul.f32 %v74_v60, %v74_v60 }
  0x4b   :  { %v123_v13 = vadd.f32 %v122_v9, %v60_v4  ;;  %v255_v15 = vadd.f32 %v254_v11, %v192_v6  ;;  %v76_v4 = vld [vmem:[#allocation2 + $0x198] sm:$0xff]  ;;  %v208_v6 = vmul.f32 %v75_v0, %v75_v0 }
  0x4d   :  { %v124_v17 = vadd.f32 %v123_v13, %v61_v8  ;;  %v256_v19 = vadd.f32 %v255_v15, %v193_v10  ;;  %v77_v8 = vld [vmem:[#allocation2 + $0x1a0] sm:$0xff]  ;;  %v209_v10 = vmul.f32 %v76_v4, %v76_v4 }
  0x4f   :  { %v125_v21 = vadd.f32 %v124_v17, %v62_v12  ;;  %v257_v23 = vadd.f32 %v256_v19, %v194_v14  ;;  %v78_v12 = vld [vmem:[#allocation2 + $0x1a8] sm:$0xff]  ;;  %v210_v14 = vmul.f32 %v77_v8, %v77_v8 }
  0x51   :  { %v126_v25 = vadd.f32 %v125_v21, %v63_v16  ;;  %v258_v27 = vadd.f32 %v257_v23, %v195_v18  ;;  %v79_v16 = vld [vmem:[#allocation2 + $0x1b0] sm:$0xff]  ;;  %v211_v18 = vmul.f32 %v78_v12, %v78_v12 }
  0x53   :  { %v127_v29 = vadd.f32 %v126_v25, %v64_v20  ;;  %v259_v31 = vadd.f32 %v258_v27, %v196_v22  ;;  %v80_v20 = vld [vmem:[#allocation2 + $0x1b8] sm:$0xff]  ;;  %v212_v22 = vmul.f32 %v79_v16, %v79_v16 }
  0x55   :  { %v128_v33 = vadd.f32 %v127_v29, %v65_v24  ;;  %v260_v35 = vadd.f32 %v259_v31, %v197_v26  ;;  %v81_v24 = vld [vmem:[#allocation2 + $0x1c0] sm:$0xff]  ;;  %v213_v26 = vmul.f32 %v80_v20, %v80_v20 }
  0x57   :  { %v129_v37 = vadd.f32 %v128_v33, %v66_v28  ;;  %v261_v39 = vadd.f32 %v260_v35, %v198_v30  ;;  %v82_v28 = vld [vmem:[#allocation2 + $0x1c8] sm:$0xff]  ;;  %v214_v30 = vmul.f32 %v81_v24, %v81_v24 }
  0x59   :  { %v130_v41 = vadd.f32 %v129_v37, %v67_v32  ;;  %v262_v43 = vadd.f32 %v261_v39, %v199_v34  ;;  %v83_v32 = vld [vmem:[#allocation2 + $0x1d0] sm:$0xff]  ;;  %v215_v34 = vmul.f32 %v82_v28, %v82_v28 }
  0x5b   :  { %v131_v45 = vadd.f32 %v130_v41, %v68_v36  ;;  %v263_v47 = vadd.f32 %v262_v43, %v200_v38  ;;  %v84_v36 = vld [vmem:[#allocation2 + $0x1d8] sm:$0xff]  ;;  %v216_v38 = vmul.f32 %v83_v32, %v83_v32 }
  0x5d   :  { %v132_v49 = vadd.f32 %v131_v45, %v69_v40  ;;  %v264_v51 = vadd.f32 %v263_v47, %v201_v42  ;;  %v85_v40 = vld [vmem:[#allocation2 + $0x1e0] sm:$0xff]  ;;  %v217_v42 = vmul.f32 %v84_v36, %v84_v36 }
  0x5f   :  { %v133_v53 = vadd.f32 %v132_v49, %v70_v44  ;;  %v265_v55 = vadd.f32 %v264_v51, %v202_v46  ;;  %v86_v44 = vld [vmem:[#allocation2 + $0x1e8] sm:$0xff]  ;;  %v218_v46 = vmul.f32 %v85_v40, %v85_v40 }
  0x61   :  { %v134_v57 = vadd.f32 %v133_v53, %v71_v48  ;;  %v266_v59 = vadd.f32 %v265_v55, %v203_v50  ;;  %v87_v48 = vld [vmem:[#allocation2 + $0x1f0] sm:$0xff]  ;;  %v219_v50 = vmul.f32 %v86_v44, %v86_v44 }
  0x63   :  { %v135_v61 = vadd.f32 %v134_v57, %v72_v52  ;;  %v267_v63 = vadd.f32 %v266_v59, %v204_v54  ;;  %v88_v52 = vld [vmem:[#allocation2 + $0x1f8] sm:$0xff]  ;;  %v220_v54 = vmul.f32 %v87_v48, %v87_v48 }
  0x64   :  { %v221_v57 = vmul.f32 %v88_v52, %v88_v52 }
  0x65   :  { %v136_v1 = vadd.f32 %v135_v61, %v73_v56  ;;  %v268_v3 = vadd.f32 %v267_v63, %v205_v58 }
  0x67   :  { %v137_v5 = vadd.f32 %v136_v1, %v74_v60  ;;  %v269_v7 = vadd.f32 %v268_v3, %v206_v62 }
  0x69   :  { %v138_v9 = vadd.f32 %v137_v5, %v75_v0  ;;  %v270_v11 = vadd.f32 %v269_v7, %v207_v2 }
  0x6b   :  { %v139_v13 = vadd.f32 %v138_v9, %v76_v4  ;;  %v271_v15 = vadd.f32 %v270_v11, %v208_v6 }
  0x6d   :  { %v140_v17 = vadd.f32 %v139_v13, %v77_v8  ;;  %v272_v19 = vadd.f32 %v271_v15, %v209_v10 }
  0x6f   :  { %v141_v21 = vadd.f32 %v140_v17, %v78_v12  ;;  %v273_v23 = vadd.f32 %v272_v19, %v210_v14 }
  0x71   :  { %v142_v25 = vadd.f32 %v141_v21, %v79_v16  ;;  %v274_v27 = vadd.f32 %v273_v23, %v211_v18 }
  0x73   :  { %v143_v29 = vadd.f32 %v142_v25, %v80_v20  ;;  %v275_v31 = vadd.f32 %v274_v27, %v212_v22 }
  0x75   :  { %v144_v33 = vadd.f32 %v143_v29, %v81_v24  ;;  %v276_v35 = vadd.f32 %v275_v31, %v213_v26 }
  0x77   :  { %v145_v37 = vadd.f32 %v144_v33, %v82_v28  ;;  %v277_v39 = vadd.f32 %v276_v35, %v214_v30 }
  0x79   :  { %v146_v41 = vadd.f32 %v145_v37, %v83_v32  ;;  %v278_v43 = vadd.f32 %v277_v39, %v215_v34 }
  0x7b   :  { %v147_v45 = vadd.f32 %v146_v41, %v84_v36  ;;  %v279_v47 = vadd.f32 %v278_v43, %v216_v38 }
  0x7d   :  { %v148_v49 = vadd.f32 %v147_v45, %v85_v40  ;;  %v280_v51 = vadd.f32 %v279_v47, %v217_v42 }
  0x7f   :  { %v149_v53 = vadd.f32 %v148_v49, %v86_v44  ;;  %v281_v55 = vadd.f32 %v280_v51, %v218_v46 }
  0x81   :  { %v150_v56 = vadd.f32 %v149_v53, %v87_v48  ;;  %v282_v58 = vadd.f32 %v281_v55, %v219_v50 }
  0x83   :  { %v151_v59 = vadd.f32 %v150_v56, %v88_v52  ;;  %v283_v60 = vadd.f32 %v282_v58, %v220_v54 }
  0x85   :  { %v152_v61 = vrot.slane %v151_v59, 4  ;;  %v284_v62 = vadd.f32 %v283_v60, %v221_v57 }
  0x87   :  { %v153_v63 = vadd.f32 %v152_v61, %v151_v59  ;;  %v285_v0 = vrot.slane %v284_v62, 4 }
  0x89   :  { %v154_v1 = vrot.slane %v153_v63, 2  ;;  %v286_v2 = vadd.f32 %v285_v0, %v284_v62 }
  0x8b   :  { %v155_v3 = vadd.f32 %v154_v1, %v153_v63  ;;  %v287_v4 = vrot.slane %v286_v2, 2 }
  0x8d   :  { %v156_v5 = vrot.slane %v155_v3, 1  ;;  %v288_v6 = vadd.f32 %v287_v4, %v286_v2 }
  0x8f   :  { %v157_v7 = vadd.f32 %v156_v5, %v155_v3  ;;  %v289_v8 = vrot.slane %v288_v6, 1 }
  0x91   :  { %v290_v9 = vadd.f32 %v289_v8, %v288_v6 }
  0x93   :  { %v292_v10 = vsel %vm291_vm0, %v157_v7, %v290_v9 }
  0x94   :  { %293 = vst [vmem:[#allocation5] sm:$0x3] %v292_v10 }
  0x95   :  { %304 = dma.vmem_to_hbm [thread:$0]  %s300_s13, 32, %s302_s16, [#allocation4]  }
  0x96   :  { %365 = dma.done.wait [#allocation4], 32  }
  0x97   :  { %366 = vsyncadd [#allocation4], 4294967264 }
  0x98   :  { %309 = vsyncpa [#allocation3], 1 }
  0x99   :  { %310 = vsyncpa [#allocation4], 1 }

</bundles_post_ra>
